<compile_context>
chip_gen: v5e
topology: v5e:2x2
jax: 0.10.0
libtpu: 0.0.40
codegen_flags: <defaults>
</compile_context>

<pallas_src>
from functools import partial

import jax
import jax.numpy as jnp
from jax import lax
from jax.experimental import pallas as pl
from jax.experimental.pallas import tpu as pltpu

LANES = 128
SUBLANES = 8
TILE_ROWS = 2048   # (2048,128) f32 = 1 MiB per input per grid step
N_SPLITS = 2       # leading "parallel" axis -> ~2x on v7x (2 TCs); no-op on 1-TC chips


# ----------------------------------------------------------------------------
# Kernels
# ----------------------------------------------------------------------------
def _rmsle_small_kernel(p_ref, a_ref, o_ref, *, n_elements):
    """Whole problem in one block: elementwise logs, one reduce, sqrt."""
    p = p_ref[...].astype(jnp.float32)
    a = a_ref[...].astype(jnp.float32)
    d = jnp.log(p + 1.0) - jnp.log(a + 1.0)
    # Any zero padding contributes log(1)-log(1) = 0 to the sum.
    o_ref[0, 0] = jnp.sqrt(jnp.sum(d * d) / jnp.float32(n_elements))


def _rmsle_tiled_kernel(
    p_ref, a_ref, o_ref, *,
    tiles_per_split, n_rows, first_masked_tile, any_masking,
):
    """Row-tiled streaming reduction.

    Grid = (split, tile).  Each split accumulates its partial sums into a
    resident (8,128) output block; the cross-lane reduce, mean and sqrt are
    done by the wrapper in plain jnp.
    """
    s = pl.program_id(0)
    t = pl.program_id(1)

    @pl.when(t == 0)
    def _():
        o_ref[...] = jnp.zeros_like(o_ref)

    p = p_ref[...].astype(jnp.float32)
    a = a_ref[...].astype(jnp.float32)
    d = jnp.log(p + 1.0) - jnp.log(a + 1.0)
    sq = d * d

    def fold(x):
        # (TILE_ROWS,128) -> (8,128): pure vector adds, no cross-lane traffic.
        return jnp.sum(x.reshape(TILE_ROWS // SUBLANES, SUBLANES, LANES), axis=0)

    if not any_masking:
        # Everything divides evenly: mask-free steady state.
        o_ref[...] += fold(sq)
    else:
        g = s * tiles_per_split + t  # logical (unclamped) tile index

        @pl.when(g < first_masked_tile)
        def _():
            o_ref[...] += fold(sq)

        @pl.when(g >= first_masked_tile)
        def _():
            # Last (partial) tile and any overflow tiles of an uneven split:
            # discard rows past the real array extent with a true select so
            # garbage/NaN from the out-of-range region cannot propagate.
            row = g * TILE_ROWS + lax.broadcasted_iota(
                jnp.int32, (TILE_ROWS, LANES), 0
            )
            o_ref[...] += fold(jnp.where(row < n_rows, sq, 0.0))


# ----------------------------------------------------------------------------
# Wrapper
# ----------------------------------------------------------------------------
def rmsle_loss(pred, actual):
    assert pred.shape == actual.shape
    n = pred.size

    p_flat = pred.reshape(-1)
    a_flat = actual.reshape(-1)

    # Pad only when n is not lane-aligned (n % 128 != 0).  The zero padding
    # contributes 0 to the squared-log-diff sum; the true n is still used for
    # the mean.  All other raggedness is handled by the in-kernel mask.
    if n % LANES != 0:
        pad = LANES - (n % LANES)
        p_flat = jnp.pad(p_flat, (0, pad))
        a_flat = jnp.pad(a_flat, (0, pad))

    rows = p_flat.size // LANES
    p2 = p_flat.reshape(rows, LANES)   # free reshape (contiguous)
    a2 = a_flat.reshape(rows, LANES)

    itemsize = jnp.dtype(pred.dtype).itemsize
    cost = pl.CostEstimate(
        flops=4 * n,
        transcendentals=2 * n,
        bytes_accessed=2 * n * itemsize + 4,
    )

    if rows <= TILE_ROWS:
        # Single invocation: whole slab in VMEM, no phases, no accumulator.
        out = pl.pallas_call(
            partial(_rmsle_small_kernel, n_elements=n),
            out_shape=jax.ShapeDtypeStruct((1, 1), jnp.float32),
            grid=(1,),
            in_specs=[
                pl.BlockSpec((rows, LANES), lambda i: (0, 0)),
                pl.BlockSpec((rows, LANES), lambda i: (0, 0)),
            ],
            out_specs=pl.BlockSpec(memory_space=pltpu.SMEM),
            cost_estimate=cost,
        )(p2, a2)
        return out[0, 0]

    # Large path: row-tiled, pipelined, split across cores on the leading axis.
    num_tiles = pl.cdiv(rows, TILE_ROWS)
    n_splits = min(N_SPLITS, num_tiles)
    tiles_per_split = pl.cdiv(num_tiles, n_splits)
    # First tile index that needs masking (ragged last tile) — overflow tiles
    # (g >= num_tiles) of an uneven split are masked by the same comparison.
    first_masked_tile = num_tiles - 1 if rows % TILE_ROWS != 0 else num_tiles
    any_masking = first_masked_tile < n_splits * tiles_per_split

    def in_map(s, t):
        # Clamp overflow iterations onto the last real tile; their
        # contribution is zeroed in-kernel by the row mask.
        return (jnp.minimum(s * tiles_per_split + t, num_tiles - 1), 0)

    partials = pl.pallas_call(
        partial(
            _rmsle_tiled_kernel,
            tiles_per_split=tiles_per_split,
            n_rows=rows,
            first_masked_tile=first_masked_tile,
            any_masking=any_masking,
        ),
        out_shape=jax.ShapeDtypeStruct((n_splits * SUBLANES, LANES), jnp.float32),
        grid=(n_splits, tiles_per_split),
        in_specs=[
            pl.BlockSpec((TILE_ROWS, LANES), in_map),
            pl.BlockSpec((TILE_ROWS, LANES), in_map),
        ],
        out_specs=pl.BlockSpec((SUBLANES, LANES), lambda s, t: (s, 0)),
        compiler_params=pltpu.CompilerParams(
            dimension_semantics=("parallel", "arbitrary"),
        ),
        cost_estimate=cost,
    )(p2, a2)

    # Final combine: tiny (n_splits*8*128) sum + mean + sqrt in plain jnp.
    return jnp.sqrt(jnp.sum(partials) / jnp.float32(n))


def rmsle_ref(pred, actual):
    d = jnp.log(pred.astype(jnp.float32) + 1.0) - jnp.log(
        actual.astype(jnp.float32) + 1.0
    )
    return jnp.sqrt(jnp.mean(d * d))


if __name__ == "__main__":
    key = jax.random.PRNGKey(0)
    k1, k2 = jax.random.split(key)

    # Shipped small case: NCHW (2,4,16,16) -> single-block path.
    # Positive inputs (log(x+1) must be well-defined), like regression targets.
    shape = (2, 4, 16, 16)
    pred = jax.random.uniform(k1, shape, jnp.float32, minval=0.0, maxval=10.0)
    actual = jax.random.uniform(k2, shape, jnp.float32, minval=0.0, maxval=10.0)
    loss = rmsle_loss(pred, actual)
    jax.block_until_ready(loss)
    ref = rmsle_ref(pred, actual)
    assert jnp.allclose(loss, ref, rtol=1e-5, atol=1e-6), (loss, ref)

    # Ragged large case: 5096 rows -> 3 tiles of 2048, split 2 ways.
    # Exercises the tiled path, the core split, an overflow (clamped) tile and
    # the partial-last-tile row mask.
    big_shape = (5096, 128)
    bp = jax.random.uniform(k1, big_shape, jnp.float32, minval=0.0, maxval=10.0)
    ba = jax.random.uniform(k2, big_shape, jnp.float32, minval=0.0, maxval=10.0)
    big_loss = rmsle_loss(bp, ba)
    jax.block_until_ready(big_loss)
    big_ref = rmsle_ref(bp, ba)
    assert jnp.allclose(big_loss, big_ref, rtol=5e-5, atol=1e-6), (big_loss, big_ref)

    # Non-lane-aligned case (n % 128 != 0): exercises the pad-to-128 branch.
    odd_shape = (3, 5, 7, 11)  # 1155 elements
    op = jax.random.uniform(k1, odd_shape, jnp.float32, minval=0.0, maxval=10.0)
    oa = jax.random.uniform(k2, odd_shape, jnp.float32, minval=0.0, maxval=10.0)
    odd_loss = rmsle_loss(op, oa)
    jax.block_until_ready(odd_loss)
    odd_ref = rmsle_ref(op, oa)
    assert jnp.allclose(odd_loss, odd_ref, rtol=1e-5, atol=1e-6), (odd_loss, odd_ref)

    print("KERNEL_OK")
</pallas_src>

<mosaic_0001>
module attributes {stable_mosaic.version = 11 : i64} {
  func.func @_rmsle_small_kernel(%arg0: i32, %arg1: memref<16x128xf32, #tpu.memory_space<vmem>>, %arg2: memref<16x128xf32, #tpu.memory_space<vmem>>, %arg3: memref<1x1xf32, #tpu.memory_space<smem>>) attributes {dimension_semantics = [#tpu.dimension_semantics<arbitrary>], iteration_bounds = array<i64: 1>, scalar_prefetch = 0 : i64, scratch_operands = 0 : i64, tpu.core_type = #tpu.core_type<tc>, window_params = [{pipeline_mode = #tpu.pipeline_mode<synchronous>, transform_indices = @transform_0, window_bounds = array<i64: 16, 128>}, {pipeline_mode = #tpu.pipeline_mode<synchronous>, transform_indices = @transform_1, window_bounds = array<i64: 16, 128>}, {transform_indices = @transform_2, window_bounds = array<i64: 1, 1>}]} {
    %c0 = arith.constant 0 : index
    %c0_0 = arith.constant 0 : index
    %0 = vector.load %arg1[%c0, %c0_0] : memref<16x128xf32, #tpu.memory_space<vmem>>, vector<16x128xf32>
    %c0_1 = arith.constant 0 : index
    %c0_2 = arith.constant 0 : index
    %1 = vector.load %arg2[%c0_1, %c0_2] : memref<16x128xf32, #tpu.memory_space<vmem>>, vector<16x128xf32>
    %cst = arith.constant 1.000000e+00 : f32
    %2 = vector.broadcast %cst : f32 to vector<16x128xf32>
    %3 = arith.addf %0, %2 : vector<16x128xf32>
    %4 = math.log %3 : vector<16x128xf32>
    %cst_3 = arith.constant 1.000000e+00 : f32
    %5 = vector.broadcast %cst_3 : f32 to vector<16x128xf32>
    %6 = arith.addf %1, %5 : vector<16x128xf32>
    %7 = math.log %6 : vector<16x128xf32>
    %8 = arith.subf %4, %7 : vector<16x128xf32>
    %9 = arith.mulf %8, %8 : vector<16x128xf32>
    %10 = vector.shape_cast %9 : vector<16x128xf32> to vector<1x16x128xf32>
    %cst_4 = arith.constant dense<0.000000e+00> : vector<1xf32>
    %11 = vector.multi_reduction <add>, %10, %cst_4 [1, 2] : vector<1x16x128xf32> to vector<1xf32>
    %12 = vector.shape_cast %11 : vector<1xf32> to vector<1x1x1xf32>
    %13 = vector.extract %12[0, 0, 0] : f32 from vector<1x1x1xf32>
    %cst_5 = arith.constant 2.048000e+03 : f32
    %14 = arith.divf %13, %cst_5 : f32
    %15 = math.sqrt %14 : f32
    %c0_6 = arith.constant 0 : index
    %c0_7 = arith.constant 0 : index
    %16 = memref.load %arg3[%c0_6, %c0_7] : memref<1x1xf32, #tpu.memory_space<smem>>
    memref.store %15, %arg3[%c0_6, %c0_7] : memref<1x1xf32, #tpu.memory_space<smem>>
    return
  }
  func.func @transform_0(%arg0: i32) -> (i32, i32) {
    %c0_i32 = arith.constant 0 : i32
    %c0_i32_0 = arith.constant 0 : i32
    %c0_i32_1 = arith.constant 0 : i32
    return %c0_i32, %c0_i32_0 : i32, i32
  }
  func.func @transform_1(%arg0: i32) -> (i32, i32) {
    %c0_i32 = arith.constant 0 : i32
    %c0_i32_0 = arith.constant 0 : i32
    %c0_i32_1 = arith.constant 0 : i32
    return %c0_i32, %c0_i32_0 : i32, i32
  }
  func.func @transform_2(%arg0: i32) -> (i32, i32) {
    %c0_i32 = arith.constant 0 : i32
    %c0_i32_0 = arith.constant 0 : i32
    %c0_i32_1 = arith.constant 0 : i32
    return %c0_i32, %c0_i32_0 : i32, i32
  }
}

</mosaic_0001>

<bundles_post_ra>
// kernel: tpu_custom_call.1
= control target key start
LH: loop header
LB: loop body
LE: loop exit
PB: predicated region body
PF: predicated region fallthrough
CT: control target
= control target key end

     0   :  { %7 = vsyncpa [#allocation3], 0  ;;  %s236_s0 = inlined_call_operand.hbm [shape: f32[16,128], index: 0, kind: input, shape index: {}]   ;;  %s237_s1 = inlined_call_operand.hbm [shape: f32[16,128], index: 1, kind: input, shape index: {}]   ;;  %s238_s2 = inlined_call_operand.hbm [shape: f32[1,1], index: 2, kind: output, shape index: {}]  }
   0x1   :  { %8 = vsyncpa [#allocation6], 0 }
   0x2   :  { %9 = vsyncpa [#allocation4], 0  ;;  %s14_s11 = sshll.u32 %s236_s0, 4  ;;  %s206_s12 = smov [#allocation2]   ;;  %s15_s11 = int_to_ptr.hbm [resolvable:$true] %s14_s11 }
   0x3   :  { %s16_s13 = sshll.u32 %s206_s12, 4  ;;  %s27_s16 = sshll.u32 %s237_s1, 4  ;;  %s17_s13 = int_to_ptr.vmem [resolvable:$true] %s16_s13  ;;  %s28_s16 = int_to_ptr.hbm [resolvable:$true] %s27_s16 }
   0x4   :  { %s207_s17 = smov 128   ;;  %s208_s18 = smov 8  }
   0x5   :  { %22 = dma.hbm_to_vmem [thread:$0]  %s15_s11, 256, %s17_s13, [#allocation3], %s207_s17, %s207_s17, %s208_s18  }
   0x6   :  { %s209_s19 = smov [#allocation5]  }
   0x7   :  { %s29_s20 = sshll.u32 %s209_s19, 4  ;;  %s30_s20 = int_to_ptr.vmem [resolvable:$true] %s29_s20 }
   0x8   :  { %35 = dma.hbm_to_vmem [thread:$0]  %s28_s16, 256, %s30_s20, [#allocation6], %s207_s17, %s207_s17, %s208_s18  }
   0x9   :  { %200 = dma.done.wait [#allocation3], 256  }
   0xa   :  { %201 = vsyncadd [#allocation3], 4294967040 }
   0xb   :  { %202 = dma.done.wait [#allocation6], 256  }
   0xc   :  { %203 = vsyncadd [#allocation6], 4294967040  ;;  %v44_v0 = vld [vmem:[#allocation2] sm:$0xff]  ;;  %v45_v1 = vld [vmem:[#allocation2 + $0x8] sm:$0xff]  ;;  %v210_v21 = vmov 2048.0   ;;  %s104_s24 = sshll.u32 %s238_s2, 4  ;;  %s105_s24 = int_to_ptr.hbm [resolvable:$true] %s104_s24 }
   0xd   :  { %v46_v2 = vld [vmem:[#allocation5] sm:$0xff]  ;;  %v47_v3 = vld [vmem:[#allocation5 + $0x8] sm:$0xff]  ;;  %v48_v4 = vadd.f32 1.0, %v44_v0  ;;  %v49_v5 = vadd.f32 1.0, %v45_v1  ;;  %s211_s26 = smov [#allocation7]  }
   0xe   :  { %v54_v6 = vadd.f32 1.0, %v46_v2  ;;  %v55_v7 = vadd.f32 1.0, %v47_v3 }
   0xf   :  { %128 = vlog2.f32 %v48_v4 }
  0x10   :  { %130 = vlog2.f32 %v49_v5 }
  0x11   :  { %132 = vlog2.f32 %v54_v6 }
  0x12   :  { %134 = vlog2.f32 %v55_v7 }
  0x13   :  { %136 = vrcp.f32 %v210_v21 }
  0x15   :  { %v129_v8 = vpop.eup %128 }
  0x16   :  { %v131_v9 = vpop.eup %130  ;;  %v51_v10 = vmul.f32 0.6931472, %v129_v8 }
  0x17   :  { %v133_v11 = vpop.eup %132  ;;  %v53_v12 = vmul.f32 0.6931472, %v131_v9 }
  0x18   :  { %v135_v13 = vpop.eup %134  ;;  %v57_v14 = vmul.f32 0.6931472, %v133_v11 }
  0x19   :  { %v59_v15 = vmul.f32 0.6931472, %v135_v13  ;;  %v137_v22 = vpop.eup %136 }
  0x1a   :  { %v60_v16 = vsub.f32 %v51_v10, %v57_v14  ;;  %v75_v23 = vmul.f32 2048.0, %v137_v22  ;;  %vm79_vm0 = vweird.f32 %v137_v22 }
  0x1b   :  { %v61_v17 = vsub.f32 %v53_v12, %v59_v15 }
  0x1c   :  { %v62_v18 = vmul.f32 %v60_v16, %v60_v16  ;;  %v76_v24 = vsub.f32 1.0, %v75_v23 }
  0x1d   :  { %v63_v19 = vmul.f32 %v61_v17, %v61_v17 }
  0x1e   :  { %v77_v28 = vmul.f32 %v137_v22, %v76_v24 }
  0x1f   :  { %v64_v20 = vadd.f32 %v63_v19, %v62_v18 }
  0x20   :  { %v78_v31 = vadd.f32 %v137_v22, %v77_v28 }
  0x21   :  { %65 = vadd.xlane.f32.xlu0 %v64_v20 }
  0x22   :  { %v80_v34 = vsel %vm79_vm0, %v137_v22, %v78_v31 }
  0x94   :  { %v66_v25 = vpop.xlane.xlu0 %65 }
  0x95   :  { %v67_v26 = vrot.slane %v66_v25, 4 }
  0x97   :  { %v68_v27 = vadd.f32 %v67_v26, %v66_v25 }
  0x99   :  { %v69_v29 = vrot.slane %v68_v27, 2 }
  0x9b   :  { %v70_v30 = vadd.f32 %v69_v29, %v68_v27 }
  0x9d   :  { %v71_v32 = vrot.slane %v70_v30, 1 }
  0x9f   :  { %v72_v33 = vadd.f32 %v71_v32, %v70_v30 }
  0xa1   :  { %116 = vpush %v72_v33 }
  0xa2   :  { %118 = vpush %v80_v34 }
  0xd2   :  { %s117_s0 = spop %116 }
  0xd3   :  { %s119_s1 = spop %118 }
  0xd4   :  { %s82_s21 = smul.f32 %s119_s1, %s117_s0 }
  0xd6   :  { %v83_v35 = vstv %s82_s21 }
  0xd7   :  { %138 = vrsqrt.f32 %v83_v35  ;;  %vm91_vm1 = vcmp.eq.f32.partialorder %v83_v35, inf  ;;  %v94_v43 = vand.u32 2147483648, %v83_v35  ;;  %vm93_vm2 = vcmp.eq.f32.partialorder %v83_v35, 0.0 }
  0xdd   :  { %v139_v36 = vpop.eup %138 }
  0xde   :  { %v85_v37 = vmul.f32 %v139_v36, %v83_v35 }
  0xe0   :  { %v86_v38 = vmul.f32 %v139_v36, %v85_v37 }
  0xe2   :  { %v87_v39 = vmul.f32 0.5, %v86_v38 }
  0xe4   :  { %v88_v40 = vsub.f32 1.5, %v87_v39 }
  0xe6   :  { %v89_v41 = vmul.f32 %v139_v36, %v88_v40 }
  0xe8   :  { %v90_v42 = vmul.f32 %v89_v41, %v83_v35 }
  0xea   :  { %v92_v44 = vsel %vm91_vm1, %v83_v35, %v90_v42 }
  0xeb   :  { %v95_v45 = vsel %vm93_vm2, %v94_v43, %v92_v44 }
  0xec   :  { %120 = vpush %v95_v45 }
 0x11d   :  { %s121_s25 = spop %120 }
 0x11e   :  { %98 = sst [smem:[#allocation7]] %s121_s25 }
 0x11f   :  { %107 = dma.smem_to_hbm %s211_s26, 16, %s105_s24, [#allocation4]  }
 0x120   :  { %204 = dma.done.wait [#allocation4], 16  }
 0x121   :  { %205 = vsyncadd [#allocation4], 4294967280 }
 0x122   :  { %112 = sfence }
 0x123   :  { %113 = vsyncpa [#allocation3], 1 }
 0x124   :  { %114 = vsyncpa [#allocation6], 1 }
 0x125   :  { %115 = vsyncpa [#allocation4], 1 }

</bundles_post_ra>
